<compile_context>
chip_gen: v7x
topology: tpu7x:2x2x1
jax: 0.10.0
libtpu: 0.0.40
codegen_flags: <defaults>
</compile_context>

<pallas_src>
import functools

import jax
import jax.numpy as jnp
from jax.experimental import pallas as pl
from jax.experimental.pallas import tpu as pltpu

LANE = 128  # TPU vreg lane width


def _round_up(n, m):
    return ((n + m - 1) // m) * m


@functools.lru_cache(maxsize=None)
def _vmem_capacity_bytes():
    try:
        return int(pltpu.get_tpu_info().vmem_capacity_bytes)
    except Exception:
        return 64 * 1024 * 1024  # conservative (v7x) fallback


def _classifier_kernel(x_ref, w1_ref, gamma_ref, beta_ref, w2_ref, o_ref):
    # x tile arrives f32; cast to the matmul dtype in-kernel (cheap VPU cast,
    # hidden under the MXU) instead of a separate XLA cast pass over x in HBM.
    x = x_ref[...].astype(w1_ref.dtype)

    # classifier_fc: Linear(F, F, bias=False) on the MXU, f32 accumulation.
    h = jnp.dot(x, w1_ref[...], preferred_element_type=jnp.float32)

    # classifier_norm_fc: LayerNorm(F, eps=1e-12), biased variance, all stats f32
    # (v5e has no bf16 VPU/EUP; f32 elementwise everywhere).
    mean = jnp.mean(h, axis=-1, keepdims=True)
    centered = h - mean
    var = jnp.mean(centered * centered, axis=-1, keepdims=True)
    normed = centered * jax.lax.rsqrt(var + 1e-12)
    normed = normed * gamma_ref[...] + beta_ref[...]

    # classifier_act_fc: Tanh (EUP, f32), then classifier: Linear(F, C_pad,
    # bias=False) into a lane-dense (multiple-of-128) output tile.
    a = jnp.tanh(normed).astype(w2_ref.dtype)
    o_ref[...] = jnp.dot(a, w2_ref[...],
                         preferred_element_type=jnp.float32).astype(o_ref.dtype)


def prepare_params(w_fc, gamma, beta, w_cls, matmul_dtype=jnp.bfloat16):
    """One-time parameter conversion (do NOT call per forward step):
      * torch-style (out, in) -> (in, out) so the kernel computes x @ W,
      * zero-pad the classifier head to a lane-dense C_pad (multiple of 128),
      * cast matmul weights to `matmul_dtype` (default bf16; LN affine stays f32).
    Returns (w1, gamma2d, beta2d, w2_padded, num_class)."""
    feat_num = w_fc.shape[0]
    num_class = w_cls.shape[0]
    c_pad = max(LANE, _round_up(num_class, LANE))

    w1 = jnp.asarray(w_fc, jnp.float32).T.astype(matmul_dtype)          # (F, F)
    w2 = jnp.zeros((feat_num, c_pad), dtype=matmul_dtype)
    w2 = w2.at[:, :num_class].set(
        jnp.asarray(w_cls, jnp.float32).T.astype(matmul_dtype))         # (F, C_pad)
    gamma2d = jnp.asarray(gamma, jnp.float32).reshape(1, feat_num)
    beta2d = jnp.asarray(beta, jnp.float32).reshape(1, feat_num)
    return w1, gamma2d, beta2d, w2, num_class


@functools.partial(jax.jit, static_argnames=("num_class", "block_b", "out_dtype"))
def classifier_forward(x, w1, gamma2d, beta2d, w2, *, num_class,
                       block_b=512, out_dtype=jnp.float32):
    """x: (B, F) f32; params from prepare_params(). Returns (B, num_class) logits."""
    B, F = x.shape
    c_pad = w2.shape[1]

    # Batch tile selection:
    #   * default 512-row tiles (~85% HBM roofline; amortizes per-step overhead),
    #   * when B fits one tile, still split into >=2 tiles so the "parallel"
    #     grid axis shards across v7x's two TensorCores (harmless on v5e/v6e).
    if B <= 8:
        TB = B
    elif B <= block_b:
        TB = min(_round_up(pl.cdiv(B, 2), 8), block_b)
    else:
        TB = block_b
    grid = (pl.cdiv(B, TB),)

    # Generation-aware VMEM budget: single-buffered resident weights +
    # double-buffered x/out batch tiles, capped at chip capacity minus headroom.
    w_bytes = jnp.dtype(w1.dtype).itemsize
    x_bytes = jnp.dtype(x.dtype).itemsize
    o_bytes = jnp.dtype(out_dtype).itemsize
    resident = (F * F + F * c_pad) * w_bytes + 2 * F * 4      # weights + gamma/beta
    tiles = 2 * TB * (F * x_bytes + c_pad * o_bytes)          # 2x buffered x & out
    cap = _vmem_capacity_bytes()
    vmem_limit = int(min(max(cap - 8 * 1024 * 1024, 32 * 1024 * 1024),
                         max(32 * 1024 * 1024, 2 * (resident + tiles))))

    out = pl.pallas_call(
        _classifier_kernel,
        out_shape=jax.ShapeDtypeStruct((B, c_pad), out_dtype),
        grid=grid,
        in_specs=[
            # x: tiled over batch, double-buffered by default (overlaps DMA/MXU).
            pl.BlockSpec((TB, F), lambda i: (i, 0)),
            # Grid-invariant params: single-buffered (constant index_map -> no
            # benefit from double-buffering; halves weight VMEM footprint).
            pl.BlockSpec((F, F), lambda i: (0, 0), pipeline_mode=pl.Buffered(1)),
            pl.BlockSpec((1, F), lambda i: (0, 0), pipeline_mode=pl.Buffered(1)),
            pl.BlockSpec((1, F), lambda i: (0, 0), pipeline_mode=pl.Buffered(1)),
            pl.BlockSpec((F, c_pad), lambda i: (0, 0), pipeline_mode=pl.Buffered(1)),
        ],
        out_specs=pl.BlockSpec((TB, c_pad), lambda i: (i, 0)),
        compiler_params=pltpu.CompilerParams(
            dimension_semantics=("parallel",),   # batch tiles shard across v7x TCs
            vmem_limit_bytes=vmem_limit,
        ),
    )(x, w1, gamma2d, beta2d, w2)

    return out[:, :num_class]


def init_params(key, feat_num, num_class):
    """Matches weights_init_classifier: Linear weights ~ N(0, 0.001), no bias;
    LayerNorm weight=1, bias=0 (bias frozen but still applied)."""
    k1, k2 = jax.random.split(key)
    w_fc = 0.001 * jax.random.normal(k1, (feat_num, feat_num), dtype=jnp.float32)
    w_cls = 0.001 * jax.random.normal(k2, (num_class, feat_num), dtype=jnp.float32)
    gamma = jnp.ones((feat_num,), dtype=jnp.float32)
    beta = jnp.zeros((feat_num,), dtype=jnp.float32)
    return w_fc, gamma, beta, w_cls


if __name__ == "__main__":
    key = jax.random.PRNGKey(0)
    kx, kp = jax.random.split(key)

    batch, feat_num, num_class = 8, 32, 16
    x = jax.random.normal(kx, (batch, feat_num), dtype=jnp.float32)
    w_fc, gamma, beta, w_cls = init_params(kp, feat_num, num_class)

    # Pure-JAX reference with PyTorch semantics.
    h = x @ w_fc.T
    mu = h.mean(-1, keepdims=True)
    var = ((h - mu) ** 2).mean(-1, keepdims=True)
    ref = jnp.tanh((h - mu) / jnp.sqrt(var + 1e-12) * gamma + beta) @ w_cls.T

    # Default bf16 MXU path (LN/tanh stay f32), looser tolerance.
    w1b, g2b, b2b, w2b, Cb = prepare_params(w_fc, gamma, beta, w_cls)  # bf16 default
    out_bf16 = jax.block_until_ready(
        classifier_forward(x, w1b, g2b, b2b, w2b, num_class=Cb))
    assert out_bf16.shape == (batch, num_class)
    assert jnp.allclose(out_bf16, ref, atol=5e-3), "bf16 mismatch vs reference"

    # f32 matmul path (tight tolerance).
    w1, g2, b2, w2, C = prepare_params(w_fc, gamma, beta, w_cls,
                                       matmul_dtype=jnp.float32)
    out_f32 = jax.block_until_ready(classifier_forward(x, w1, g2, b2, w2, num_class=C))
    assert out_f32.shape == (batch, num_class)
    assert jnp.allclose(out_f32, ref, atol=1e-5), "f32 mismatch vs reference"

    print("KERNEL_OK")
</pallas_src>

<mosaic_0001>
module attributes {stable_mosaic.version = 11 : i64} {
  func.func @_classifier_kernel(%arg0: i32, %arg1: memref<8x32xf32, #tpu.memory_space<vmem>>, %arg2: memref<32x32xbf16, #tpu.memory_space<vmem>>, %arg3: memref<1x32xf32, #tpu.memory_space<vmem>>, %arg4: memref<1x32xf32, #tpu.memory_space<vmem>>, %arg5: memref<32x128xbf16, #tpu.memory_space<vmem>>, %arg6: memref<8x128xf32, #tpu.memory_space<vmem>>) attributes {dimension_semantics = [#tpu.dimension_semantics<parallel>], iteration_bounds = array<i64: 1>, scalar_prefetch = 0 : i64, scratch_operands = 0 : i64, tpu.core_type = #tpu.core_type<tc>, window_params = [{transform_indices = @transform_0, window_bounds = array<i64: 8, 32>}, {pipeline_mode = #tpu.pipeline_mode<synchronous>, transform_indices = @transform_1, window_bounds = array<i64: 32, 32>}, {pipeline_mode = #tpu.pipeline_mode<synchronous>, transform_indices = @transform_2, window_bounds = array<i64: 1, 32>}, {pipeline_mode = #tpu.pipeline_mode<synchronous>, transform_indices = @transform_3, window_bounds = array<i64: 1, 32>}, {pipeline_mode = #tpu.pipeline_mode<synchronous>, transform_indices = @transform_4, window_bounds = array<i64: 32, 128>}, {transform_indices = @transform_5, window_bounds = array<i64: 8, 128>}]} {
    %c0 = arith.constant 0 : index
    %c0_0 = arith.constant 0 : index
    %0 = vector.load %arg1[%c0, %c0_0] : memref<8x32xf32, #tpu.memory_space<vmem>>, vector<8x32xf32>
    %1 = arith.truncf %0 : vector<8x32xf32> to vector<8x32xbf16>
    %c0_1 = arith.constant 0 : index
    %c0_2 = arith.constant 0 : index
    %2 = vector.load %arg2[%c0_1, %c0_2] : memref<32x32xbf16, #tpu.memory_space<vmem>>, vector<32x32xbf16>
    %cst = arith.constant dense<0.000000e+00> : vector<8x32xf32>
    %3 = tpu.matmul %1, %2, %cst {dimension_numbers = #tpu.dot_dimension_numbers<[1], [0], [0], [1], [0, 0, 1, 1], [], []>} : vector<8x32xbf16>, vector<32x32xbf16>, vector<8x32xf32> -> vector<8x32xf32>
    %cst_3 = arith.constant dense<0.000000e+00> : vector<8xf32>
    %4 = vector.multi_reduction <add>, %3, %cst_3 [1] : vector<8x32xf32> to vector<8xf32>
    %5 = vector.shape_cast %4 : vector<8xf32> to vector<8x1xf32>
    %cst_4 = arith.constant 3.200000e+01 : f32
    %6 = vector.broadcast %cst_4 : f32 to vector<8x1xf32>
    %7 = arith.divf %5, %6 : vector<8x1xf32>
    %8 = vector.broadcast %7 : vector<8x1xf32> to vector<8x32xf32>
    %9 = arith.subf %3, %8 : vector<8x32xf32>
    %10 = arith.mulf %9, %9 : vector<8x32xf32>
    %cst_5 = arith.constant dense<0.000000e+00> : vector<8xf32>
    %11 = vector.multi_reduction <add>, %10, %cst_5 [1] : vector<8x32xf32> to vector<8xf32>
    %12 = vector.shape_cast %11 : vector<8xf32> to vector<8x1xf32>
    %cst_6 = arith.constant 3.200000e+01 : f32
    %13 = vector.broadcast %cst_6 : f32 to vector<8x1xf32>
    %14 = arith.divf %12, %13 : vector<8x1xf32>
    %cst_7 = arith.constant 9.99999996E-13 : f32
    %15 = vector.broadcast %cst_7 : f32 to vector<8x1xf32>
    %16 = arith.addf %14, %15 : vector<8x1xf32>
    %17 = math.rsqrt %16 : vector<8x1xf32>
    %18 = vector.broadcast %17 : vector<8x1xf32> to vector<8x32xf32>
    %19 = arith.mulf %9, %18 : vector<8x32xf32>
    %c0_8 = arith.constant 0 : index
    %c0_9 = arith.constant 0 : index
    %20 = vector.load %arg3[%c0_8, %c0_9] : memref<1x32xf32, #tpu.memory_space<vmem>>, vector<1x32xf32>
    %21 = vector.broadcast %20 : vector<1x32xf32> to vector<8x32xf32>
    %22 = arith.mulf %19, %21 : vector<8x32xf32>
    %c0_10 = arith.constant 0 : index
    %c0_11 = arith.constant 0 : index
    %23 = vector.load %arg4[%c0_10, %c0_11] : memref<1x32xf32, #tpu.memory_space<vmem>>, vector<1x32xf32>
    %24 = vector.broadcast %23 : vector<1x32xf32> to vector<8x32xf32>
    %25 = arith.addf %22, %24 : vector<8x32xf32>
    %26 = math.tanh %25 : vector<8x32xf32>
    %27 = arith.truncf %26 : vector<8x32xf32> to vector<8x32xbf16>
    %c0_12 = arith.constant 0 : index
    %c0_13 = arith.constant 0 : index
    %28 = vector.load %arg5[%c0_12, %c0_13] : memref<32x128xbf16, #tpu.memory_space<vmem>>, vector<32x128xbf16>
    %cst_14 = arith.constant dense<0.000000e+00> : vector<8x128xf32>
    %29 = tpu.matmul %27, %28, %cst_14 {dimension_numbers = #tpu.dot_dimension_numbers<[1], [0], [0], [1], [0, 0, 1, 1], [], []>} : vector<8x32xbf16>, vector<32x128xbf16>, vector<8x128xf32> -> vector<8x128xf32>
    %c0_15 = arith.constant 0 : index
    %c0_16 = arith.constant 0 : index
    %30 = vector.load %arg6[%c0_15, %c0_16] : memref<8x128xf32, #tpu.memory_space<vmem>>, vector<8x128xf32>
    tpu.vector_store %arg6[%c0_15, %c0_16], %29 {strides = array<i32>} : memref<8x128xf32, #tpu.memory_space<vmem>>, vector<8x128xf32>,
    return
  }
  func.func @transform_0(%arg0: i32) -> (i32, i32) {
    %c0_i32 = arith.constant 0 : i32
    %c0_i32_0 = arith.constant 0 : i32
    return %arg0, %c0_i32 : i32, i32
  }
  func.func @transform_1(%arg0: i32) -> (i32, i32) {
    %c0_i32 = arith.constant 0 : i32
    %c0_i32_0 = arith.constant 0 : i32
    %c0_i32_1 = arith.constant 0 : i32
    return %c0_i32, %c0_i32_0 : i32, i32
  }
  func.func @transform_2(%arg0: i32) -> (i32, i32) {
    %c0_i32 = arith.constant 0 : i32
    %c0_i32_0 = arith.constant 0 : i32
    %c0_i32_1 = arith.constant 0 : i32
    return %c0_i32, %c0_i32_0 : i32, i32
  }
  func.func @transform_3(%arg0: i32) -> (i32, i32) {
    %c0_i32 = arith.constant 0 : i32
    %c0_i32_0 = arith.constant 0 : i32
    %c0_i32_1 = arith.constant 0 : i32
    return %c0_i32, %c0_i32_0 : i32, i32
  }
  func.func @transform_4(%arg0: i32) -> (i32, i32) {
    %c0_i32 = arith.constant 0 : i32
    %c0_i32_0 = arith.constant 0 : i32
    %c0_i32_1 = arith.constant 0 : i32
    return %c0_i32, %c0_i32_0 : i32, i32
  }
  func.func @transform_5(%arg0: i32) -> (i32, i32) {
    %c0_i32 = arith.constant 0 : i32
    %c0_i32_0 = arith.constant 0 : i32
    return %arg0, %c0_i32 : i32, i32
  }
}

</mosaic_0001>

<bundles_post_ra>
// kernel: classifier_forward.1
= control target key start
LH: loop header
LB: loop body
LE: loop exit
PB: predicated region body
PF: predicated region fallthrough
CT: control target
= control target key end

     0   :  { %10 = vsyncpa [#allocation3], 0  ;;  %s473_s0 = inlined_call_operand.hbm [shape: f32[8,32], index: 0, kind: input, shape index: {}]   ;;  %s474_s1 = inlined_call_operand.hbm [shape: bf16[32,32], index: 1, kind: input, shape index: {}]   ;;  %s475_s2 = inlined_call_operand.vmem [shape: f32[1,32], index: 2, kind: input, shape index: {}]   ;;  %s476_s3 = inlined_call_operand.vmem [shape: f32[1,32], index: 3, kind: input, shape index: {}]   ;;  %s477_s4 = inlined_call_operand.hbm [shape: bf16[32,128], index: 4, kind: input, shape index: {}]   ;;  %s478_s5 = inlined_call_operand.hbm [shape: f32[8,128], index: 5, kind: output, shape index: {}]  }
   0x1   :  { %11 = vsyncpa [#allocation6], 0 }
   0x2   :  { %12 = vsyncpa [#allocation4], 0  ;;  %s371_s18 = smov [#allocation5]   ;;  %s277_s22 = scalar_lea.hbm %s474_s1, 256 }
   0x3   :  { %s28_s19 = sshll.u32 %s371_s18, 4  ;;  %p278_p0 = scmp.ne.s32.totalorder %s474_s1, %s277_s22  ;;  %s29_s19 = int_to_ptr.vmem [resolvable:$true] %s28_s19 }
   0x4   :  { %p281_p1 = scmp.lt.u32.totalorder %s277_s22, %s474_s1 }
   0x6   :  { %p283_p2 = pnand %p281_p1, %p278_p0 }
   0x8   :  { %286 = shalt.err (!%p283_p2)
}
   0x9   :  { %s287_s27 = scalar_lea.vmem %s29_s19, 256  ;;  %p292_p4 = scmp.lt.s32.totalorder %s29_s19, %s29_s19 }
   0xa   :  { %p288_p3 = scmp.ne.s32.totalorder %s29_s19, %s287_s27  ;;  %p293_p5 = scmp.lt.s32.totalorder %s287_s27, %s287_s27 }
   0xc   :  { %p294_p6 = por %p293_p5, %p292_p4 }
   0xe   :  { %p295_p7 = pnand %p294_p6, %p288_p3 }
  0x10   :  { %298 = shalt.err (!%p295_p7)
}
  0x11   :  { %s372_s28 = smov 64   ;;  %s373_s29 = smov 4  }
  0x12   :  { %34 = dma.hbm_to_vmem [thread:$0]  %s474_s1, 256, %s29_s19, [#allocation6], %s372_s28, %s372_s28, %s373_s29  }
  0x13   :  { %s374_s7 = smov [#allocation2]   ;;  %s375_s9 = smov [#allocation7]  }
  0x14   :  { %s19_s8 = sshll.u32 %s374_s7, 4  ;;  %s44_s10 = sshll.u32 %s375_s9, 4  ;;  %s20_s8 = int_to_ptr.vmem [resolvable:$true] %s19_s8  ;;  %s45_s10 = int_to_ptr.vmem [resolvable:$true] %s44_s10 }
  0x15   :  { %s299_s13 = scalar_lea.hbm %s473_s0, 128 }
  0x16   :  { %p300_p8 = scmp.ne.s32.totalorder %s473_s0, %s299_s13  ;;  %p303_p9 = scmp.lt.u32.totalorder %s299_s13, %s473_s0 }
  0x18   :  { %p305_p10 = pnand %p303_p9, %p300_p8 }
  0x1a   :  { %308 = shalt.err (!%p305_p10)
}
  0x1b   :  { %s309_s1 = scalar_lea.vmem %s20_s8, 128  ;;  %p314_p12 = scmp.lt.s32.totalorder %s20_s8, %s20_s8 }
  0x1c   :  { %p310_p11 = scmp.ne.s32.totalorder %s20_s8, %s309_s1  ;;  %p315_p13 = scmp.lt.s32.totalorder %s309_s1, %s309_s1 }
  0x1e   :  { %p316_p0 = por %p315_p13, %p314_p12 }
  0x20   :  { %p317_p1 = pnand %p316_p0, %p310_p11 }
  0x22   :  { %320 = shalt.err (!%p317_p1)
}
  0x23   :  { %22 = dma.hbm_to_vmem [thread:$0]  %s473_s0, 128, %s20_s8, [#allocation3]  }
  0x24   :  { %s321_s22 = scalar_lea.hbm %s477_s4, 256 }
  0x25   :  { %p322_p2 = scmp.ne.s32.totalorder %s477_s4, %s321_s22  ;;  %p325_p3 = scmp.lt.u32.totalorder %s321_s22, %s477_s4 }
  0x27   :  { %p327_p4 = pnand %p325_p3, %p322_p2 }
  0x29   :  { %330 = shalt.err (!%p327_p4)
}
  0x2a   :  { %s331_s27 = scalar_lea.vmem %s45_s10, 256  ;;  %p336_p6 = scmp.lt.s32.totalorder %s45_s10, %s45_s10 }
  0x2b   :  { %p332_p5 = scmp.ne.s32.totalorder %s45_s10, %s331_s27  ;;  %p337_p7 = scmp.lt.s32.totalorder %s331_s27, %s331_s27 }
  0x2d   :  { %p338_p8 = por %p337_p7, %p336_p6 }
  0x2f   :  { %p339_p9 = pnand %p338_p8, %p332_p5 }
  0x31   :  { %342 = shalt.err (!%p339_p9)
}
  0x32   :  { %50 = dma.hbm_to_vmem [thread:$0]  %s477_s4, 256, %s45_s10, [#allocation6], %s372_s28, %s372_s28, %s373_s29  }
  0x33   :  { %365 = dma.done.wait [#allocation3], 128  }
  0x34   :  { %366 = vsyncadd [#allocation3], 4294967168 }
  0x35   :  { %367 = dma.done.wait [#allocation6], 512  }
  0x36   :  { %368 = vsyncadd [#allocation6], 4294966784  ;;  %v376_v0 = vmov 0.0   ;;  %vm377_vm0 = vmmov 0   ;;  %v269_v1 = vld [vmem:[#allocation5] sm:$0xff]   ;;  %v270_v2 = vld [vmem:[#allocation5 + $0x8] sm:$0xff]  }
  0x37   :  { %245 = vmatprep.subr.bf16.mxu0 %v376_v0  ;;  %249 = vmatprep.mubr.msk.bf16.mxu0 %vm377_vm0, %v376_v0  ;;  %v61_v3 = vld [vmem:[#allocation2] sm:$0xff]  ;;  %vm79_vm1 = vcmask 261120   ;;  %v271_v15 = vld [vmem:[#allocation7] sm:$0xff]   ;;  %s378_s7 = smov [#allocation8]  }
  0x38   :  { %253 = vmatprep.subr.bf16.mxu1 %v376_v0  ;;  %257 = vmatprep.mubr.msk.bf16.mxu1 %vm377_vm0, %v376_v0  ;;  %v62_v4 = vpack.c.bf16 %v61_v3, %v61_v3  ;;  %v272_v16 = vld [vmem:[#allocation7 + $0x8] sm:$0xff]   ;;  %s221_s8 = sshll.u32 %s378_s7, 4  ;;  %s222_s8 = int_to_ptr.vmem [resolvable:$true] %s221_s8 }
  0x39   :  { %246 = vmatpush3.bf16.msra.mxu0 %v269_v1  ;;  %254 = vmatpush3.bf16.msra.mxu1 %v271_v15  ;;  %v234_v21 = vld [vmem:[%s475_s2] ss:$0 sm:$0xff]  ;;  %s343_s2 = scalar_lea.vmem %s222_s8, 128  ;;  %p348_p11 = scmp.lt.s32.totalorder %s222_s8, %s222_s8 }
  0x3a   :  { %247 = vmatprep.subr.bf16.mxu0 %v376_v0  ;;  %255 = vmatprep.subr.bf16.mxu1 %v376_v0  ;;  %v235_v23 = vld [vmem:[%s476_s3] ss:$0 sm:$0xff]  ;;  %p344_p10 = scmp.ne.s32.totalorder %s222_s8, %s343_s2  ;;  %p349_p12 = scmp.lt.s32.totalorder %s343_s2, %s343_s2 }
  0x3c   :  { %p350_p13 = por %p349_p12, %p348_p11 }
  0x3d   :  { %248 = vmatpush3.bf16.msra.mxu0 %v270_v2  ;;  %256 = vmatpush3.bf16.msra.mxu1 %v272_v16 }
  0x3e   :  { %p351_p0 = pnand %p350_p13, %p344_p10 }
  0x40   :  { %250 = vmatmul.mubr.msk.bf16.vlgmr.msra.gmra.mrb[0].mxu0 %vm79_vm1, %v62_v4 }
 0x113   :  { %v117_v5 = vpop.f32.mrb[0].mxu0 }
 0x114   :  { %v251_v6 = vpop.f32.mrb[1].mxu0  ;;  %v123_v7 = vsel %vm79_vm1, %v117_v5, 0.0 }
 0x115   :  { %124 = vadd.xlane.f32.xlu0 %v123_v7  ;;  %v120_v8 = vpop.f32.mrb[2].mxu0 }
 0x116   :  { %v252_v9 = vpop.f32.mrb[3].mxu0 }
 0x1a2   :  { %v125_v10 = vpop.xlane.xlu0 %124 }
 0x1a3   :  { %v127_v11 = vmul.f32 0.03125, %v125_v10 }
 0x1a5   :  { %v128_v12 = vsub.f32 %v117_v5, %v127_v11 }
 0x1a7   :  { %v129_v13 = vmul.f32 %v128_v12, %v128_v12 }
 0x1a9   :  { %v130_v14 = vsel %vm79_vm1, %v129_v13, 0.0 }
 0x1aa   :  { %131 = vadd.xlane.f32.xlu0 %v130_v14 }
 0x237   :  { %v132_v17 = vpop.xlane.xlu0 %131 }
 0x238   :  { %v133_v18 = vmul.f32 0.03125, %v132_v17 }
 0x23a   :  { %v134_v19 = vadd.f32 1e-12, %v133_v18 }
 0x23c   :  { %273 = vrsqrt.f32 %v134_v19 }
 0x246   :  { %v274_v20 = vpop.eup %273 }
 0x247   :  { %v136_v22 = vmul.f32 %v274_v20, %v128_v12 }
 0x249   :  { %v144_v24 = vmul.f32 %v234_v21, %v136_v22 }
 0x24b   :  { %v152_v25 = vadd.f32 %v235_v23, %v144_v24 }
 0x24d   :  { %275 = vtanh.f32 %v152_v25 }
 0x257   :  { %v276_v26 = vpop.eup %275 }
 0x258   :  { %v154_v27 = vpack.c.bf16 %v276_v26, %v276_v26 }
 0x25a   :  { %258 = vmatmul.mubr.msk.bf16.vlgmr.msra.gmra.mrb[0].mxu1 %vm79_vm1, %v154_v27 }
 0x32d   :  { %v208_v28 = vpop.f32.mrb[0].mxu1 }
 0x32e   :  { %214 = vst [vmem:[#allocation8] sm:$0xff] %v208_v28  ;;  %v259_v29 = vpop.f32.mrb[1].mxu1 }
 0x32f   :  { %v211_v30 = vpop.f32.mrb[2].mxu1 }
 0x330   :  { %354 = shalt.err (!%p351_p0)
}
 0x331   :  { %s355_s10 = scalar_lea.hbm %s478_s5, 128 }
 0x332   :  { %p356_p1 = scmp.ne.s32.totalorder %s478_s5, %s355_s10  ;;  %p359_p2 = scmp.lt.u32.totalorder %s355_s10, %s478_s5 }
 0x334   :  { %p361_p3 = pnand %p359_p2, %p356_p1 }
 0x336   :  { %364 = shalt.err (!%p361_p3)
}
 0x337   :  { %224 = dma.vmem_to_hbm [thread:$0]  %s222_s8, 128, %s478_s5, [#allocation4]   ;;  %v260_v31 = vpop.f32.mrb[3].mxu1 }
 0x338   :  { %369 = dma.done.wait [#allocation4], 128  }
 0x339   :  { %370 = vsyncadd [#allocation4], 4294967168 }
 0x33a   :  { %228 = vsyncpa [#allocation3], 1 }
 0x33b   :  { %229 = vsyncpa [#allocation6], 1 }
 0x33c   :  { %230 = vsyncpa [#allocation4], 1 }

</bundles_post_ra>
